<compile_context>
chip_gen: v6e
topology: v6e:2x2x1
jax: 0.10.0
libtpu: 0.0.40
codegen_flags: <defaults>
</compile_context>

<pallas_src>
import jax
import jax.numpy as jnp
from jax.experimental import pallas as pl
from jax.experimental.pallas import tpu as pltpu


def _gelu_tanh(x):
    # RE2 GeLU: 0.5 * x * (1 + tanh(0.7978845608 * x * (1 + 0.044715 * x^2)))
    return 0.5 * x * (1.0 + jnp.tanh(0.7978845608 * x * (1.0 + 0.044715 * x * x)))


def _round_up(n, m):
    return (n + m - 1) // m * m


def _ful_fusion_kernel(
    x_ref, a_ref,
    wx_ref,                 # (D, 3H)  = [W1x | W2x | W3x]
    w1a_ref, w2a_ref, w3a_ref,   # (D, H) each  (align-side halves)
    b123_ref,               # (1, 3H) = [b1 | b2 | b3]
    wf_ref,                 # (3H, H) = [Wf1 ; Wf2 ; Wf3]
    bf_ref,                 # (1, H)
    o_ref,                  # (tm, H)
):
    x = x_ref[...]          # keep input dtype for the MXU operands
    a = a_ref[...]

    # x-side of all three fusion branches in one wide matmul.
    zx = jnp.dot(x, wx_ref[...], preferred_element_type=jnp.float32)   # (tm, 3H)

    # align-side: three branch-specific operands -> three dots.
    za1 = jnp.dot(a, w1a_ref[...], preferred_element_type=jnp.float32)
    za2 = jnp.dot(x - a, w2a_ref[...], preferred_element_type=jnp.float32)
    za3 = jnp.dot(x * a, w3a_ref[...], preferred_element_type=jnp.float32)
    za = jnp.concatenate([za1, za2, za3], axis=-1)                      # (tm, 3H)

    # GeLU on the combined pre-activation slab (single fused bias add).
    g = _gelu_tanh(zx + za + b123_ref[...])                             # f32 (tm, 3H)

    # TODO(synk): dropout is identity in eval mode; training-mode dropout would
    # need pltpu.prng_seed / prng_random_bits masking here.

    # Final fusion: single (tm, 3H) @ (3H, H) dot.
    zf = (jnp.dot(g.astype(x.dtype), wf_ref[...],
                  preferred_element_type=jnp.float32)
          + bf_ref[...])
    o_ref[...] = _gelu_tanh(zf).astype(o_ref.dtype)


def ful_fusion(x, align, params, *, tm_max=256):
    """x, align: [..., D].  Returns [..., H]."""
    orig_shape = x.shape
    D = orig_shape[-1]
    x2 = x.reshape(-1, D)
    a2 = align.reshape(-1, D)
    M = x2.shape[0]

    (w1x, w1a, b1, w2x, w2a, b2, w3x, w3a, b3, wf1, wf2, wf3, bf) = params
    H = w1x.shape[1]

    # Lane-dense padding: D, H -> multiples of 128; M -> multiple of the row tile.
    Dp = _round_up(D, 128)
    Hp = _round_up(H, 128)
    tm = min(tm_max, _round_up(M, 8))
    Mp = _round_up(M, tm)

    def pad2(arr, rows, cols):
        return jnp.pad(arr, ((0, rows - arr.shape[0]), (0, cols - arr.shape[1])))

    xp = pad2(x2, Mp, Dp)
    ap = pad2(a2, Mp, Dp)

    # Weight re-layout (zero-padded; padded lanes contribute exact zeros and the
    # padded output columns are sliced off).  In a real model do this once.
    wx_all = jnp.concatenate(
        [pad2(w1x, Dp, Hp), pad2(w2x, Dp, Hp), pad2(w3x, Dp, Hp)], axis=1)       # (Dp, 3Hp)
    w1ap = pad2(w1a, Dp, Hp)
    w2ap = pad2(w2a, Dp, Hp)
    w3ap = pad2(w3a, Dp, Hp)
    b123 = jnp.concatenate(
        [pad2(b1, 1, Hp), pad2(b2, 1, Hp), pad2(b3, 1, Hp)], axis=1)              # (1, 3Hp)
    wf_all = jnp.concatenate(
        [pad2(wf1, Hp, Hp), pad2(wf2, Hp, Hp), pad2(wf3, Hp, Hp)], axis=0)        # (3Hp, Hp)
    bfp = pad2(bf, 1, Hp)                                                          # (1, Hp)

    row_spec = pl.BlockSpec((tm, Dp), lambda i: (i, 0))
    wx_spec = pl.BlockSpec((Dp, 3 * Hp), lambda i: (0, 0))
    wa_spec = pl.BlockSpec((Dp, Hp), lambda i: (0, 0))
    b123_spec = pl.BlockSpec((1, 3 * Hp), lambda i: (0, 0))
    wf_spec = pl.BlockSpec((3 * Hp, Hp), lambda i: (0, 0))
    bf_spec = pl.BlockSpec((1, Hp), lambda i: (0, 0))
    out_spec = pl.BlockSpec((tm, Hp), lambda i: (i, 0))

    out = pl.pallas_call(
        _ful_fusion_kernel,
        out_shape=jax.ShapeDtypeStruct((Mp, Hp), x.dtype),
        grid_spec=pltpu.PrefetchScalarGridSpec(
            num_scalar_prefetch=0,
            grid=(Mp // tm,),
            in_specs=[
                row_spec, row_spec,
                wx_spec,
                wa_spec, wa_spec, wa_spec,
                b123_spec,
                wf_spec,
                bf_spec,
            ],
            out_specs=out_spec,
        ),
        compiler_params=pltpu.CompilerParams(
            dimension_semantics=("parallel",),
            vmem_limit_bytes=48 * 1024 * 1024,
        ),
    )(xp, ap, wx_all, w1ap, w2ap, w3ap, b123, wf_all, bfp)

    out = out[:M, :H]
    return out.reshape(*orig_shape[:-1], H)


def init_params(key, input_size, hidden_size, dtype=jnp.float32):
    """Deterministic synthetic parameters matching the module's shapes.

    fusion1/2/3: Linear(2*input_size, hidden_size)  -> two (D, H) halves + (1, H) bias
    fusion:      Linear(3*hidden_size, hidden_size) -> three (H, H) thirds + (1, H) bias
    """
    keys = jax.random.split(key, 8)
    D, H = input_size, hidden_size

    def w(k, fan_in, shape):
        scale = 1.0 / jnp.sqrt(fan_in)
        return (jax.random.uniform(k, shape, jnp.float32, -scale, scale)).astype(dtype)

    w1 = w(keys[0], 2 * D, (2 * D, H))
    w2 = w(keys[1], 2 * D, (2 * D, H))
    w3 = w(keys[2], 2 * D, (2 * D, H))
    wf = w(keys[3], 3 * H, (3 * H, H))
    b1 = w(keys[4], 2 * D, (1, H))
    b2 = w(keys[5], 2 * D, (1, H))
    b3 = w(keys[6], 2 * D, (1, H))
    bf = w(keys[7], 3 * H, (1, H))

    return (
        w1[:D], w1[D:], b1,
        w2[:D], w2[D:], b2,
        w3[:D], w3[D:], b3,
        wf[:H], wf[H:2 * H], wf[2 * H:], bf,
    )


def ful_fusion_reference(x, align, params):
    """Plain-JAX reference with the same concat semantics as the PyTorch module."""
    (w1x, w1a, b1, w2x, w2a, b2, w3x, w3a, b3, wf1, wf2, wf3, bf) = params
    w1 = jnp.concatenate([w1x, w1a], 0)
    w2 = jnp.concatenate([w2x, w2a], 0)
    w3 = jnp.concatenate([w3x, w3a], 0)
    wf = jnp.concatenate([wf1, wf2, wf3], 0)
    g1 = _gelu_tanh(jnp.concatenate([x, align], -1) @ w1 + b1[0])
    g2 = _gelu_tanh(jnp.concatenate([x, x - align], -1) @ w2 + b2[0])
    g3 = _gelu_tanh(jnp.concatenate([x, x * align], -1) @ w3 + b3[0])
    g = jnp.concatenate([g1, g2, g3], -1)
    return _gelu_tanh(g @ wf + bf[0])


if __name__ == "__main__":
    key = jax.random.PRNGKey(0)
    k_x, k_a, k_p = jax.random.split(key, 3)

    batch, seq, input_size, hidden_size = 2, 8, 32, 32
    x = jax.random.normal(k_x, (batch, seq, input_size), jnp.float32)
    align = jax.random.normal(k_a, (batch, seq, input_size), jnp.float32)
    params = init_params(k_p, input_size, hidden_size)

    out = ful_fusion(x, align, params)
    out = jax.block_until_ready(out)

    ref = ful_fusion_reference(x, align, params)
    assert out.shape == (batch, seq, hidden_size)
    assert jnp.allclose(out, ref, atol=1e-4, rtol=1e-4), "mismatch vs reference"

    print("KERNEL_OK")
</pallas_src>

<mosaic_0001>
module attributes {stable_mosaic.version = 11 : i64} {
  func.func @_ful_fusion_kernel(%arg0: i32, %arg1: memref<16x128xf32, #tpu.memory_space<vmem>>, %arg2: memref<16x128xf32, #tpu.memory_space<vmem>>, %arg3: memref<128x384xf32, #tpu.memory_space<vmem>>, %arg4: memref<128x128xf32, #tpu.memory_space<vmem>>, %arg5: memref<128x128xf32, #tpu.memory_space<vmem>>, %arg6: memref<128x128xf32, #tpu.memory_space<vmem>>, %arg7: memref<1x384xf32, #tpu.memory_space<vmem>>, %arg8: memref<384x128xf32, #tpu.memory_space<vmem>>, %arg9: memref<1x128xf32, #tpu.memory_space<vmem>>, %arg10: memref<16x128xf32, #tpu.memory_space<vmem>>) attributes {dimension_semantics = [#tpu.dimension_semantics<parallel>], iteration_bounds = array<i64: 1>, scalar_prefetch = 0 : i64, scratch_operands = 0 : i64, tpu.core_type = #tpu.core_type<tc>, window_params = [{transform_indices = @transform_0, window_bounds = array<i64: 16, 128>}, {transform_indices = @transform_1, window_bounds = array<i64: 16, 128>}, {pipeline_mode = #tpu.pipeline_mode<synchronous>, transform_indices = @transform_2, window_bounds = array<i64: 128, 384>}, {pipeline_mode = #tpu.pipeline_mode<synchronous>, transform_indices = @transform_3, window_bounds = array<i64: 128, 128>}, {pipeline_mode = #tpu.pipeline_mode<synchronous>, transform_indices = @transform_4, window_bounds = array<i64: 128, 128>}, {pipeline_mode = #tpu.pipeline_mode<synchronous>, transform_indices = @transform_5, window_bounds = array<i64: 128, 128>}, {pipeline_mode = #tpu.pipeline_mode<synchronous>, transform_indices = @transform_6, window_bounds = array<i64: 1, 384>}, {pipeline_mode = #tpu.pipeline_mode<synchronous>, transform_indices = @transform_7, window_bounds = array<i64: 384, 128>}, {pipeline_mode = #tpu.pipeline_mode<synchronous>, transform_indices = @transform_8, window_bounds = array<i64: 1, 128>}, {transform_indices = @transform_9, window_bounds = array<i64: 16, 128>}]} {
    %c0 = arith.constant 0 : index
    %c0_0 = arith.constant 0 : index
    %0 = vector.load %arg1[%c0, %c0_0] : memref<16x128xf32, #tpu.memory_space<vmem>>, vector<16x128xf32>
    %c0_1 = arith.constant 0 : index
    %c0_2 = arith.constant 0 : index
    %1 = vector.load %arg2[%c0_1, %c0_2] : memref<16x128xf32, #tpu.memory_space<vmem>>, vector<16x128xf32>
    %c0_3 = arith.constant 0 : index
    %c0_4 = arith.constant 0 : index
    %2 = vector.load %arg3[%c0_3, %c0_4] : memref<128x384xf32, #tpu.memory_space<vmem>>, vector<128x384xf32>
    %cst = arith.constant dense<0.000000e+00> : vector<16x384xf32>
    %3 = tpu.matmul %0, %2, %cst {dimension_numbers = #tpu.dot_dimension_numbers<[1], [0], [0], [1], [0, 0, 1, 1], [], []>} : vector<16x128xf32>, vector<128x384xf32>, vector<16x384xf32> -> vector<16x384xf32>
    %c0_5 = arith.constant 0 : index
    %c0_6 = arith.constant 0 : index
    %4 = vector.load %arg4[%c0_5, %c0_6] : memref<128x128xf32, #tpu.memory_space<vmem>>, vector<128x128xf32>
    %cst_7 = arith.constant dense<0.000000e+00> : vector<16x128xf32>
    %5 = tpu.matmul %1, %4, %cst_7 {dimension_numbers = #tpu.dot_dimension_numbers<[1], [0], [0], [1], [0, 0, 1, 1], [], []>} : vector<16x128xf32>, vector<128x128xf32>, vector<16x128xf32> -> vector<16x128xf32>
    %6 = arith.subf %0, %1 : vector<16x128xf32>
    %c0_8 = arith.constant 0 : index
    %c0_9 = arith.constant 0 : index
    %7 = vector.load %arg5[%c0_8, %c0_9] : memref<128x128xf32, #tpu.memory_space<vmem>>, vector<128x128xf32>
    %cst_10 = arith.constant dense<0.000000e+00> : vector<16x128xf32>
    %8 = tpu.matmul %6, %7, %cst_10 {dimension_numbers = #tpu.dot_dimension_numbers<[1], [0], [0], [1], [0, 0, 1, 1], [], []>} : vector<16x128xf32>, vector<128x128xf32>, vector<16x128xf32> -> vector<16x128xf32>
    %9 = arith.mulf %0, %1 : vector<16x128xf32>
    %c0_11 = arith.constant 0 : index
    %c0_12 = arith.constant 0 : index
    %10 = vector.load %arg6[%c0_11, %c0_12] : memref<128x128xf32, #tpu.memory_space<vmem>>, vector<128x128xf32>
    %cst_13 = arith.constant dense<0.000000e+00> : vector<16x128xf32>
    %11 = tpu.matmul %9, %10, %cst_13 {dimension_numbers = #tpu.dot_dimension_numbers<[1], [0], [0], [1], [0, 0, 1, 1], [], []>} : vector<16x128xf32>, vector<128x128xf32>, vector<16x128xf32> -> vector<16x128xf32>
    %12 = tpu.concatenate %5, %8, %11 in 1 : vector<16x128xf32>, vector<16x128xf32>, vector<16x128xf32> -> vector<16x384xf32>
    %13 = arith.addf %3, %12 : vector<16x384xf32>
    %c0_14 = arith.constant 0 : index
    %c0_15 = arith.constant 0 : index
    %14 = vector.load %arg7[%c0_14, %c0_15] : memref<1x384xf32, #tpu.memory_space<vmem>>, vector<1x384xf32>
    %15 = vector.broadcast %14 : vector<1x384xf32> to vector<16x384xf32>
    %16 = arith.addf %13, %15 : vector<16x384xf32>
    %cst_16 = arith.constant 5.000000e-01 : f32
    %17 = vector.broadcast %cst_16 : f32 to vector<16x384xf32>
    %18 = arith.mulf %17, %16 : vector<16x384xf32>
    %cst_17 = arith.constant 0.797884583 : f32
    %19 = vector.broadcast %cst_17 : f32 to vector<16x384xf32>
    %20 = arith.mulf %19, %16 : vector<16x384xf32>
    %cst_18 = arith.constant 4.471500e-02 : f32
    %21 = vector.broadcast %cst_18 : f32 to vector<16x384xf32>
    %22 = arith.mulf %21, %16 : vector<16x384xf32>
    %23 = arith.mulf %22, %16 : vector<16x384xf32>
    %cst_19 = arith.constant 1.000000e+00 : f32
    %24 = vector.broadcast %cst_19 : f32 to vector<16x384xf32>
    %25 = arith.addf %24, %23 : vector<16x384xf32>
    %26 = arith.mulf %20, %25 : vector<16x384xf32>
    %27 = math.tanh %26 : vector<16x384xf32>
    %cst_20 = arith.constant 1.000000e+00 : f32
    %28 = vector.broadcast %cst_20 : f32 to vector<16x384xf32>
    %29 = arith.addf %28, %27 : vector<16x384xf32>
    %30 = arith.mulf %18, %29 : vector<16x384xf32>
    %c0_21 = arith.constant 0 : index
    %c0_22 = arith.constant 0 : index
    %31 = vector.load %arg8[%c0_21, %c0_22] : memref<384x128xf32, #tpu.memory_space<vmem>>, vector<384x128xf32>
    %cst_23 = arith.constant dense<0.000000e+00> : vector<16x128xf32>
    %32 = tpu.matmul %30, %31, %cst_23 {dimension_numbers = #tpu.dot_dimension_numbers<[1], [0], [0], [1], [0, 0, 1, 1], [], []>} : vector<16x384xf32>, vector<384x128xf32>, vector<16x128xf32> -> vector<16x128xf32>
    %c0_24 = arith.constant 0 : index
    %c0_25 = arith.constant 0 : index
    %33 = vector.load %arg9[%c0_24, %c0_25] : memref<1x128xf32, #tpu.memory_space<vmem>>, vector<1x128xf32>
    %34 = vector.broadcast %33 : vector<1x128xf32> to vector<16x128xf32>
    %35 = arith.addf %32, %34 : vector<16x128xf32>
    %cst_26 = arith.constant 5.000000e-01 : f32
    %36 = vector.broadcast %cst_26 : f32 to vector<16x128xf32>
    %37 = arith.mulf %36, %35 : vector<16x128xf32>
    %cst_27 = arith.constant 0.797884583 : f32
    %38 = vector.broadcast %cst_27 : f32 to vector<16x128xf32>
    %39 = arith.mulf %38, %35 : vector<16x128xf32>
    %cst_28 = arith.constant 4.471500e-02 : f32
    %40 = vector.broadcast %cst_28 : f32 to vector<16x128xf32>
    %41 = arith.mulf %40, %35 : vector<16x128xf32>
    %42 = arith.mulf %41, %35 : vector<16x128xf32>
    %cst_29 = arith.constant 1.000000e+00 : f32
    %43 = vector.broadcast %cst_29 : f32 to vector<16x128xf32>
    %44 = arith.addf %43, %42 : vector<16x128xf32>
    %45 = arith.mulf %39, %44 : vector<16x128xf32>
    %46 = math.tanh %45 : vector<16x128xf32>
    %cst_30 = arith.constant 1.000000e+00 : f32
    %47 = vector.broadcast %cst_30 : f32 to vector<16x128xf32>
    %48 = arith.addf %47, %46 : vector<16x128xf32>
    %49 = arith.mulf %37, %48 : vector<16x128xf32>
    %c0_31 = arith.constant 0 : index
    %c0_32 = arith.constant 0 : index
    %50 = vector.load %arg10[%c0_31, %c0_32] : memref<16x128xf32, #tpu.memory_space<vmem>>, vector<16x128xf32>
    tpu.vector_store %arg10[%c0_31, %c0_32], %49 {strides = array<i32>} : memref<16x128xf32, #tpu.memory_space<vmem>>, vector<16x128xf32>,
    return
  }
  func.func @transform_0(%arg0: i32) -> (i32, i32) {
    %c0_i32 = arith.constant 0 : i32
    %c0_i32_0 = arith.constant 0 : i32
    return %arg0, %c0_i32 : i32, i32
  }
  func.func @transform_1(%arg0: i32) -> (i32, i32) {
    %c0_i32 = arith.constant 0 : i32
    %c0_i32_0 = arith.constant 0 : i32
    return %arg0, %c0_i32 : i32, i32
  }
  func.func @transform_2(%arg0: i32) -> (i32, i32) {
    %c0_i32 = arith.constant 0 : i32
    %c0_i32_0 = arith.constant 0 : i32
    %c0_i32_1 = arith.constant 0 : i32
    return %c0_i32, %c0_i32_0 : i32, i32
  }
  func.func @transform_3(%arg0: i32) -> (i32, i32) {
    %c0_i32 = arith.constant 0 : i32
    %c0_i32_0 = arith.constant 0 : i32
    %c0_i32_1 = arith.constant 0 : i32
    return %c0_i32, %c0_i32_0 : i32, i32
  }
  func.func @transform_4(%arg0: i32) -> (i32, i32) {
    %c0_i32 = arith.constant 0 : i32
    %c0_i32_0 = arith.constant 0 : i32
    %c0_i32_1 = arith.constant 0 : i32
    return %c0_i32, %c0_i32_0 : i32, i32
  }
  func.func @transform_5(%arg0: i32) -> (i32, i32) {
    %c0_i32 = arith.constant 0 : i32
    %c0_i32_0 = arith.constant 0 : i32
    %c0_i32_1 = arith.constant 0 : i32
    return %c0_i32, %c0_i32_0 : i32, i32
  }
  func.func @transform_6(%arg0: i32) -> (i32, i32) {
    %c0_i32 = arith.constant 0 : i32
    %c0_i32_0 = arith.constant 0 : i32
    %c0_i32_1 = arith.constant 0 : i32
    return %c0_i32, %c0_i32_0 : i32, i32
  }
  func.func @transform_7(%arg0: i32) -> (i32, i32) {
    %c0_i32 = arith.constant 0 : i32
    %c0_i32_0 = arith.constant 0 : i32
    %c0_i32_1 = arith.constant 0 : i32
    return %c0_i32, %c0_i32_0 : i32, i32
  }
  func.func @transform_8(%arg0: i32) -> (i32, i32) {
    %c0_i32 = arith.constant 0 : i32
    %c0_i32_0 = arith.constant 0 : i32
    %c0_i32_1 = arith.constant 0 : i32
    return %c0_i32, %c0_i32_0 : i32, i32
  }
  func.func @transform_9(%arg0: i32) -> (i32, i32) {
    %c0_i32 = arith.constant 0 : i32
    %c0_i32_0 = arith.constant 0 : i32
    return %arg0, %c0_i32 : i32, i32
  }
}

</mosaic_0001>

<bundles_post_ra>
// kernel: tpu_custom_call.1
= control target key start
LH: loop header
LB: loop body
LE: loop exit
PB: predicated region body
PF: predicated region fallthrough
CT: control target
= control target key end

     0   :  { %14 = vsyncpa [#allocation3], 0  ;;  %s1570_s0 = inlined_call_operand.hbm [shape: f32[16,128], index: 0, kind: input, shape index: {}]   ;;  %s1571_s1 = inlined_call_operand.hbm [shape: f32[16,128], index: 1, kind: input, shape index: {}]   ;;  %s1572_s2 = inlined_call_operand.hbm [shape: f32[128,384], index: 2, kind: input, shape index: {}]   ;;  %s1573_s3 = inlined_call_operand.hbm [shape: f32[128,128], index: 3, kind: input, shape index: {}]   ;;  %s1574_s4 = inlined_call_operand.hbm [shape: f32[128,128], index: 4, kind: input, shape index: {}]   ;;  %s1575_s5 = inlined_call_operand.hbm [shape: f32[128,128], index: 5, kind: input, shape index: {}]   ;;  %s1576_s6 = inlined_call_operand.vmem [shape: f32[1,384], index: 6, kind: input, shape index: {}]   ;;  %s1577_s7 = inlined_call_operand.hbm [shape: f32[384,128], index: 7, kind: input, shape index: {}]   ;;  %s1578_s8 = inlined_call_operand.vmem [shape: f32[1,128], index: 8, kind: input, shape index: {}]   ;;  %s1579_s9 = inlined_call_operand.hbm [shape: f32[16,128], index: 9, kind: output, shape index: {}]  }
   0x1   :  { %15 = vsyncpa [#allocation6], 0 }
   0x2   :  { %16 = vsyncpa [#allocation9], 0 }
   0x3   :  { %17 = vsyncpa [#allocation12], 0 }
   0x4   :  { %18 = vsyncpa [#allocation4], 0  ;;  %s1434_s30 = smov [#allocation5]   ;;  %s1435_s11 = smov [#allocation8]  }
   0x5   :  { %s36_s10 = sshll.u32 %s1434_s30, 4  ;;  %s60_s12 = sshll.u32 %s1435_s11, 4  ;;  %s37_s10 = int_to_ptr.vmem [resolvable:$true] %s36_s10  ;;  %s61_s12 = int_to_ptr.vmem [resolvable:$true] %s60_s12 }
   0x6   :  { %s1272_s13 = scalar_lea.vmem %s37_s10, 256  ;;  %p1277_p1 = scmp.lt.s32.totalorder %s37_s10, %s37_s10 }
   0x7   :  { %p1273_p0 = scmp.ne.s32.totalorder %s37_s10, %s1272_s13  ;;  %p1278_p2 = scmp.lt.s32.totalorder %s1272_s13, %s1272_s13 }
   0x9   :  { %p1279_p3 = por %p1278_p2, %p1277_p1 }
   0xb   :  { %p1280_p4 = pnand %p1279_p3, %p1273_p0 }
   0xd   :  { %1283 = shalt.err (!%p1280_p4)
}
   0xe   :  { %s1436_s14 = smov 128   ;;  %s1437_s15 = smov 8  }
   0xf   :  { %42 = dma.hbm_to_vmem [thread:$0]  %s1571_s1, 256, %s37_s10, [#allocation6], %s1436_s14, %s1436_s14, %s1437_s15  }
  0x10   :  { %s1292_s18 = scalar_lea.vmem %s61_s12, 2048  ;;  %p1297_p6 = scmp.lt.s32.totalorder %s61_s12, %s61_s12 }
  0x11   :  { %p1293_p5 = scmp.ne.s32.totalorder %s61_s12, %s1292_s18  ;;  %p1298_p7 = scmp.lt.s32.totalorder %s1292_s18, %s1292_s18 }
  0x13   :  { %p1299_p8 = por %p1298_p7, %p1297_p6 }
  0x15   :  { %p1300_p9 = pnand %p1299_p8, %p1293_p5 }
  0x17   :  { %1303 = shalt.err (!%p1300_p9)
}
  0x18   :  { %66 = dma.hbm_to_vmem [thread:$0]  %s1573_s3, 2048, %s61_s12, [#allocation9], %s1436_s14, %s1436_s14, %s1437_s15  }
  0x19   :  { %s1438_s21 = smov [#allocation11]   ;;  %s1439_s23 = smov [#allocation2]  }
  0x1a   :  { %s84_s22 = sshll.u32 %s1438_s21, 4  ;;  %s24_s24 = sshll.u32 %s1439_s23, 4  ;;  %s85_s22 = int_to_ptr.vmem [resolvable:$true] %s84_s22  ;;  %s25_s24 = int_to_ptr.vmem [resolvable:$true] %s24_s24 }
  0x1b   :  { %s1312_s1 = scalar_lea.vmem %s85_s22, 2048  ;;  %p1317_p11 = scmp.lt.s32.totalorder %s85_s22, %s85_s22 }
  0x1c   :  { %p1313_p10 = scmp.ne.s32.totalorder %s85_s22, %s1312_s1  ;;  %p1318_p12 = scmp.lt.s32.totalorder %s1312_s1, %s1312_s1 }
  0x1e   :  { %p1319_p13 = por %p1318_p12, %p1317_p11 }
  0x20   :  { %p1320_p0 = pnand %p1319_p13, %p1313_p10 }
  0x22   :  { %1323 = shalt.err (!%p1320_p0)
}
  0x23   :  { %90 = dma.hbm_to_vmem [thread:$0]  %s1575_s5, 2048, %s85_s22, [#allocation12], %s1436_s14, %s1436_s14, %s1437_s15  }
  0x24   :  { %s1332_s3 = scalar_lea.vmem %s25_s24, 256  ;;  %p1337_p2 = scmp.lt.s32.totalorder %s25_s24, %s25_s24 }
  0x25   :  { %p1333_p1 = scmp.ne.s32.totalorder %s25_s24, %s1332_s3  ;;  %p1338_p3 = scmp.lt.s32.totalorder %s1332_s3, %s1332_s3 }
  0x27   :  { %p1339_p4 = por %p1338_p3, %p1337_p2 }
  0x29   :  { %p1340_p5 = pnand %p1339_p4, %p1333_p1 }
  0x2b   :  { %1343 = shalt.err (!%p1340_p5)
}
  0x2c   :  { %30 = dma.hbm_to_vmem [thread:$0]  %s1570_s0, 256, %s25_s24, [#allocation3], %s1436_s14, %s1436_s14, %s1437_s15  }
  0x2d   :  { %s1440_s29 = smov [#allocation7]  }
  0x2e   :  { %s48_s30 = sshll.u32 %s1440_s29, 4  ;;  %s49_s30 = int_to_ptr.vmem [resolvable:$true] %s48_s30 }
  0x2f   :  { %s1352_s10 = scalar_lea.vmem %s49_s30, 6144  ;;  %p1357_p7 = scmp.lt.s32.totalorder %s49_s30, %s49_s30 }
  0x30   :  { %p1353_p6 = scmp.ne.s32.totalorder %s49_s30, %s1352_s10  ;;  %p1358_p8 = scmp.lt.s32.totalorder %s1352_s10, %s1352_s10 }
  0x32   :  { %p1359_p9 = por %p1358_p8, %p1357_p7 }
  0x34   :  { %p1360_p10 = pnand %p1359_p9, %p1353_p6 }
  0x36   :  { %1363 = shalt.err (!%p1360_p10)
}
  0x37   :  { %s1441_s5 = smov 384   ;;  %s1442_s11 = smov 24  }
  0x38   :  { %54 = dma.hbm_to_vmem [thread:$0]  %s1572_s2, 6144, %s49_s30, [#allocation6], %s1441_s5, %s1441_s5, %s1442_s11  }
  0x39   :  { %s1443_s16 = smov [#allocation10]   ;;  %s1444_s0 = smov [#allocation13]  }
  0x3a   :  { %s72_s17 = sshll.u32 %s1443_s16, 4  ;;  %s98_s18 = sshll.u32 %s1444_s0, 4  ;;  %s73_s17 = int_to_ptr.vmem [resolvable:$true] %s72_s17  ;;  %s99_s18 = int_to_ptr.vmem [resolvable:$true] %s98_s18 }
  0x3b   :  { %s1372_s19 = scalar_lea.vmem %s73_s17, 2048  ;;  %p1377_p12 = scmp.lt.s32.totalorder %s73_s17, %s73_s17 }
  0x3c   :  { %p1373_p11 = scmp.ne.s32.totalorder %s73_s17, %s1372_s19  ;;  %p1378_p13 = scmp.lt.s32.totalorder %s1372_s19, %s1372_s19 }
  0x3e   :  { %p1379_p0 = por %p1378_p13, %p1377_p12 }
  0x40   :  { %p1380_p1 = pnand %p1379_p0, %p1373_p11 }
  0x42   :  { %1383 = shalt.err (!%p1380_p1)
}
  0x43   :  { %78 = dma.hbm_to_vmem [thread:$0]  %s1574_s4, 2048, %s73_s17, [#allocation9], %s1436_s14, %s1436_s14, %s1437_s15  }
  0x44   :  { %s1392_s2 = scalar_lea.vmem %s99_s18, 6144  ;;  %p1397_p3 = scmp.lt.s32.totalorder %s99_s18, %s99_s18 }
  0x45   :  { %p1393_p2 = scmp.ne.s32.totalorder %s99_s18, %s1392_s2  ;;  %p1398_p4 = scmp.lt.s32.totalorder %s1392_s2, %s1392_s2 }
  0x47   :  { %p1399_p5 = por %p1398_p4, %p1397_p3 }
  0x49   :  { %p1400_p6 = pnand %p1399_p5, %p1393_p2 }
  0x4b   :  { %1403 = shalt.err (!%p1400_p6)
}
  0x4c   :  { %104 = dma.hbm_to_vmem [thread:$0]  %s1577_s7, 6144, %s99_s18, [#allocation12], %s1436_s14, %s1436_s14, %s1437_s15  }
  0x4d   :  { %1424 = dma.done.wait [#allocation3], 256  }
  0x4e   :  { %1425 = vsyncadd [#allocation3], 4294967040 }
  0x4f   :  { %1426 = dma.done.wait [#allocation6], 6400  }
  0x50   :  { %1427 = vsyncadd [#allocation6], 4294960896 }
  0x51   :  { %1428 = dma.done.wait [#allocation9], 4096  }
  0x52   :  { %1429 = vsyncadd [#allocation9], 4294963200 }
  0x53   :  { %1430 = dma.done.wait [#allocation12], 8192  }
  0x54   :  { %1431 = vsyncadd [#allocation12], 4294959104  ;;  %v195_v0 = vld [vmem:[#allocation8 + $0x78] sm:$0xff]  ;;  %v194_v2 = vld [vmem:[#allocation8 + $0x70] sm:$0xff] }
  0x55   :  { %v288_v1 = vld [vmem:[#allocation10 + $0x78] sm:$0xff]  ;;  %1060 = vmatprep.subr.mxu0 %v195_v0  ;;  %v287_v3 = vld [vmem:[#allocation10 + $0x70] sm:$0xff]  ;;  %v193_v4 = vld [vmem:[#allocation8 + $0x68] sm:$0xff] }
  0x56   :  { %1095 = vmatprep.subr.mxu1 %v288_v1  ;;  %1061 = vmatpush3.msra.mxu0 %v195_v0  ;;  %v286_v5 = vld [vmem:[#allocation10 + $0x68] sm:$0xff]  ;;  %v192_v6 = vld [vmem:[#allocation8 + $0x60] sm:$0xff]  ;;  %v191_v8 = vld [vmem:[#allocation8 + $0x58] sm:$0xff] }
  0x57   :  { %1096 = vmatpush3.msra.mxu1 %v288_v1  ;;  %1062 = vmatprep.subr.mxu0 %v194_v2  ;;  %v285_v7 = vld [vmem:[#allocation10 + $0x60] sm:$0xff]  ;;  %v284_v9 = vld [vmem:[#allocation10 + $0x58] sm:$0xff]  ;;  %v190_v10 = vld [vmem:[#allocation8 + $0x50] sm:$0xff] }
  0x58   :  { %1097 = vmatprep.subr.mxu1 %v287_v3  ;;  %1063 = vmatpush3.msra.mxu0 %v194_v2  ;;  %v283_v11 = vld [vmem:[#allocation10 + $0x50] sm:$0xff]  ;;  %v189_v12 = vld [vmem:[#allocation8 + $0x48] sm:$0xff]  ;;  %v188_v14 = vld [vmem:[#allocation8 + $0x40] sm:$0xff] }
  0x59   :  { %1098 = vmatpush3.msra.mxu1 %v287_v3  ;;  %1064 = vmatprep.subr.mxu0 %v193_v4  ;;  %v282_v13 = vld [vmem:[#allocation10 + $0x48] sm:$0xff]  ;;  %v281_v15 = vld [vmem:[#allocation10 + $0x40] sm:$0xff]  ;;  %v187_v16 = vld [vmem:[#allocation8 + $0x38] sm:$0xff] }
  0x5a   :  { %1099 = vmatprep.subr.mxu1 %v286_v5  ;;  %1065 = vmatpush3.msra.mxu0 %v193_v4  ;;  %v280_v17 = vld [vmem:[#allocation10 + $0x38] sm:$0xff]  ;;  %v186_v18 = vld [vmem:[#allocation8 + $0x30] sm:$0xff]  ;;  %v185_v20 = vld [vmem:[#allocation8 + $0x28] sm:$0xff] }
  0x5b   :  { %1100 = vmatpush3.msra.mxu1 %v286_v5  ;;  %1066 = vmatprep.subr.mxu0 %v192_v6  ;;  %v279_v19 = vld [vmem:[#allocation10 + $0x30] sm:$0xff]  ;;  %v278_v21 = vld [vmem:[#allocation10 + $0x28] sm:$0xff]  ;;  %v184_v22 = vld [vmem:[#allocation8 + $0x20] sm:$0xff] }
  0x5c   :  { %1101 = vmatprep.subr.mxu1 %v285_v7  ;;  %1067 = vmatpush3.msra.mxu0 %v192_v6  ;;  %v277_v23 = vld [vmem:[#allocation10 + $0x20] sm:$0xff]  ;;  %v183_v24 = vld [vmem:[#allocation8 + $0x18] sm:$0xff]  ;;  %v182_v26 = vld [vmem:[#allocation8 + $0x10] sm:$0xff] }
  0x5d   :  { %1102 = vmatpush3.msra.mxu1 %v285_v7  ;;  %1068 = vmatprep.subr.mxu0 %v191_v8  ;;  %v276_v25 = vld [vmem:[#allocation10 + $0x18] sm:$0xff]  ;;  %v275_v27 = vld [vmem:[#allocation10 + $0x10] sm:$0xff]  ;;  %v181_v28 = vld [vmem:[#allocation8 + $0x8] sm:$0xff] }
  0x5e   :  { %1103 = vmatprep.subr.mxu1 %v284_v9  ;;  %1069 = vmatpush3.msra.mxu0 %v191_v8  ;;  %v274_v29 = vld [vmem:[#allocation10 + $0x8] sm:$0xff]  ;;  %v180_v30 = vld [vmem:[#allocation8] sm:$0xff]  ;;  %v1536_v31 = vld [vmem:[#allocation5] sm:$0xff] }
  0x5f   :  { %1104 = vmatpush3.msra.mxu1 %v284_v9  ;;  %1070 = vmatprep.subr.mxu0 %v190_v10  ;;  %v1538_v32 = vld [vmem:[#allocation2] sm:$0xff]  ;;  %v1540_v34 = vld [vmem:[#allocation2 + $0x8] sm:$0xff]  ;;  %v1542_v35 = vld [vmem:[#allocation5 + $0x8] sm:$0xff] }
  0x60   :  { %1105 = vmatprep.subr.mxu1 %v283_v11  ;;  %1071 = vmatpush3.msra.mxu0 %v190_v10  ;;  %v273_v33 = vld [vmem:[#allocation10] sm:$0xff]  ;;  %v271_v36 = vsub.f32 %v1538_v32, %v1536_v31  ;;  %v381_v37 = vld [vmem:[#allocation11 + $0x78] sm:$0xff]  ;;  %v272_v38 = vsub.f32 %v1540_v34, %v1542_v35  ;;  %v178_v39 = vld [vmem:[#allocation7 + $0x170] sm:$0xff] }
  0x61   :  { %1106 = vmatpush3.msra.mxu1 %v283_v11  ;;  %1072 = vmatprep.subr.mxu0 %v189_v12  ;;  %v177_v40 = vld [vmem:[#allocation7 + $0x168] sm:$0xff]  ;;  %v380_v41 = vld [vmem:[#allocation11 + $0x70] sm:$0xff]  ;;  %v175_v42 = vld [vmem:[#allocation7 + $0x158] sm:$0xff] }
  0x62   :  { %1107 = vmatprep.subr.mxu1 %v282_v13  ;;  %1073 = vmatpush3.msra.mxu0 %v189_v12  ;;  %v174_v43 = vld [vmem:[#allocation7 + $0x150] sm:$0xff]  ;;  %v379_v44 = vld [vmem:[#allocation11 + $0x68] sm:$0xff]  ;;  %v172_v45 = vld [vmem:[#allocation7 + $0x140] sm:$0xff] }
  0x63   :  { %1108 = vmatpush3.msra.mxu1 %v282_v13  ;;  %1074 = vmatprep.subr.mxu0 %v188_v14  ;;  %v171_v46 = vld [vmem:[#allocation7 + $0x138] sm:$0xff]  ;;  %v378_v47 = vld [vmem:[#allocation11 + $0x60] sm:$0xff]  ;;  %v169_v48 = vld [vmem:[#allocation7 + $0x128] sm:$0xff] }
  0x64   :  { %1109 = vmatprep.subr.mxu1 %v281_v15  ;;  %1075 = vmatpush3.msra.mxu0 %v188_v14  ;;  %v168_v49 = vld [vmem:[#allocation7 + $0x120] sm:$0xff]  ;;  %v377_v50 = vld [vmem:[#allocation11 + $0x58] sm:$0xff]  ;;  %v166_v51 = vld [vmem:[#allocation7 + $0x110] sm:$0xff] }
  0x65   :  { %1110 = vmatpush3.msra.mxu1 %v281_v15  ;;  %1076 = vmatprep.subr.mxu0 %v187_v16  ;;  %v165_v52 = vld [vmem:[#allocation7 + $0x108] sm:$0xff]  ;;  %v376_v53 = vld [vmem:[#allocation11 + $0x50] sm:$0xff]  ;;  %v163_v54 = vld [vmem:[#allocation7 + $0xf8] sm:$0xff] }
  0x66   :  { %1111 = vmatprep.subr.mxu1 %v280_v17  ;;  %1077 = vmatpush3.msra.mxu0 %v187_v16  ;;  %v162_v55 = vld [vmem:[#allocation7 + $0xf0] sm:$0xff]  ;;  %v375_v56 = vld [vmem:[#allocation11 + $0x48] sm:$0xff]  ;;  %v160_v57 = vld [vmem:[#allocation7 + $0xe0] sm:$0xff] }
  0x67   :  { %1112 = vmatpush3.msra.mxu1 %v280_v17  ;;  %1078 = vmatprep.subr.mxu0 %v186_v18  ;;  %v159_v58 = vld [vmem:[#allocation7 + $0xd8] sm:$0xff]  ;;  %v374_v59 = vld [vmem:[#allocation11 + $0x40] sm:$0xff]  ;;  %v157_v60 = vld [vmem:[#allocation7 + $0xc8] sm:$0xff] }
  0x68   :  { %1113 = vmatprep.subr.mxu1 %v279_v19  ;;  %1079 = vmatpush3.msra.mxu0 %v186_v18  ;;  %v156_v61 = vld [vmem:[#allocation7 + $0xc0] sm:$0xff]  ;;  %v373_v62 = vld [vmem:[#allocation11 + $0x38] sm:$0xff]  ;;  %v154_v63 = vld [vmem:[#allocation7 + $0xb0] sm:$0xff] }
  0x69   :  { %1114 = vmatpush3.msra.mxu1 %v279_v19  ;;  %1080 = vmatprep.subr.mxu0 %v185_v20  ;;  %v153_v0 = vld [vmem:[#allocation7 + $0xa8] sm:$0xff]  ;;  %v372_v1 = vld [vmem:[#allocation11 + $0x30] sm:$0xff]  ;;  %v151_v2 = vld [vmem:[#allocation7 + $0x98] sm:$0xff] }
  0x6a   :  { %1115 = vmatprep.subr.mxu1 %v278_v21  ;;  %1081 = vmatpush3.msra.mxu0 %v185_v20  ;;  %v150_v3 = vld [vmem:[#allocation7 + $0x90] sm:$0xff]  ;;  %v371_v4 = vld [vmem:[#allocation11 + $0x28] sm:$0xff]  ;;  %v148_v5 = vld [vmem:[#allocation7 + $0x80] sm:$0xff] }
  0x6b   :  { %1116 = vmatpush3.msra.mxu1 %v278_v21  ;;  %1082 = vmatprep.subr.mxu0 %v184_v22  ;;  %v147_v6 = vld [vmem:[#allocation7 + $0x78] sm:$0xff]  ;;  %v370_v7 = vld [vmem:[#allocation11 + $0x20] sm:$0xff]  ;;  %v145_v8 = vld [vmem:[#allocation7 + $0x68] sm:$0xff]  ;;  %v364_v21 = vmul.f32 %v1536_v31, %v1538_v32 }
  0x6c   :  { %1117 = vmatprep.subr.mxu1 %v277_v23  ;;  %1083 = vmatpush3.msra.mxu0 %v184_v22  ;;  %v144_v9 = vld [vmem:[#allocation7 + $0x60] sm:$0xff]  ;;  %v369_v10 = vld [vmem:[#allocation11 + $0x18] sm:$0xff]  ;;  %v142_v11 = vld [vmem:[#allocation7 + $0x50] sm:$0xff]  ;;  %v365_v22 = vmul.f32 %v1542_v35, %v1540_v34 }
  0x6d   :  { %1118 = vmatpush3.msra.mxu1 %v277_v23  ;;  %1084 = vmatprep.subr.mxu0 %v183_v24  ;;  %v141_v12 = vld [vmem:[#allocation7 + $0x48] sm:$0xff]  ;;  %v368_v13 = vld [vmem:[#allocation11 + $0x10] sm:$0xff]  ;;  %v139_v14 = vld [vmem:[#allocation7 + $0x38] sm:$0xff] }
  0x6e   :  { %1119 = vmatprep.subr.mxu1 %v276_v25  ;;  %1085 = vmatpush3.msra.mxu0 %v183_v24  ;;  %v138_v15 = vld [vmem:[#allocation7 + $0x30] sm:$0xff]  ;;  %v367_v16 = vld [vmem:[#allocation11 + $0x8] sm:$0xff]  ;;  %v136_v17 = vld [vmem:[#allocation7 + $0x20] sm:$0xff] }
  0x6f   :  { %1120 = vmatpush3.msra.mxu1 %v276_v25  ;;  %1086 = vmatprep.subr.mxu0 %v182_v26  ;;  %v135_v18 = vld [vmem:[#allocation7 + $0x18] sm:$0xff]  ;;  %v366_v19 = vld [vmem:[#allocation11] sm:$0xff]  ;;  %v133_v20 = vld [vmem:[#allocation7 + $0x8] sm:$0xff]  ;;  %v1445_v25 = vmov 0.0  }
  0x70   :  { %1121 = vmatprep.subr.mxu1 %v275_v27  ;;  %1087 = vmatpush3.msra.mxu0 %v182_v26  ;;  %v132_v23 = vld [vmem:[#allocation7] sm:$0xff]  ;;  %v179_v24 = vld [vmem:[#allocation7 + $0x178] sm:$0xff] }
  0x71   :  { %1122 = vmatpush3.msra.mxu1 %v275_v27  ;;  %1088 = vmatprep.subr.mxu0 %v181_v28  ;;  %v176_v26 = vld [vmem:[#allocation7 + $0x160] sm:$0xff]  ;;  %v173_v27 = vld [vmem:[#allocation7 + $0x148] sm:$0xff] }
  0x72   :  { %1123 = vmatprep.subr.mxu1 %v274_v29  ;;  %1089 = vmatpush3.msra.mxu0 %v181_v28  ;;  %v170_v28 = vld [vmem:[#allocation7 + $0x130] sm:$0xff] }
  0x73   :  { %1124 = vmatpush3.msra.mxu1 %v274_v29  ;;  %1090 = vmatprep.subr.mxu0 %v180_v30  ;;  %v167_v29 = vld [vmem:[#allocation7 + $0x118] sm:$0xff] }
  0x74   :  { %1125 = vmatprep.subr.mxu1 %v273_v33  ;;  %1091 = vmatpush3.msra.mxu0 %v180_v30  ;;  %v164_v30 = vld [vmem:[#allocation7 + $0x100] sm:$0xff] }
  0x75   :  { %1092 = vmatprep.mubr.f32.mxu0 %v1536_v31  ;;  %1126 = vmatpush3.msra.mxu1 %v273_v33  ;;  %v161_v31 = vld [vmem:[#allocation7 + $0xe8] sm:$0xff]  ;;  %v158_v33 = vld [vmem:[#allocation7 + $0xd0] sm:$0xff] }
  0x76   :  { %1093 = vmatmul.mubr.f32.vlgmr.msra.gmra.mxu0 %v1542_v35  ;;  %1127 = vmatprep.mubr.f32.mxu1 %v271_v36  ;;  %v152_v35 = vld [vmem:[#allocation7 + $0xa0] sm:$0xff]  ;;  %v149_v36 = vld [vmem:[#allocation7 + $0x88] sm:$0xff] }
  0x77   :  { %1130 = vmatprep.subr.mxu0 %v381_v37  ;;  %457 = vmatprep.subr.mxu1 %v178_v39  ;;  %v140_v39 = vld [vmem:[#allocation7 + $0x40] sm:$0xff] }
  0x78   :  { %1128 = vmatmul.mubr.f32.vlgmr.msra.gmra.mxu1 %v272_v38  ;;  %1131 = vmatpush3.msra.mxu0 %v381_v37  ;;  %v146_v37 = vld [vmem:[#allocation7 + $0x70] sm:$0xff]  ;;  %v143_v38 = vld [vmem:[#allocation7 + $0x58] sm:$0xff] }
  0x79   :  { %458 = vmatpush1.msra.mxu1 %v177_v40  ;;  %1132 = vmatprep.subr.mxu0 %v380_v41  ;;  %v137_v40 = vld [vmem:[#allocation7 + $0x28] sm:$0xff] }
  0x7a   :  { %459 = vmatprep.subr.mxu1 %v175_v42  ;;  %1133 = vmatpush3.msra.mxu0 %v380_v41  ;;  %v134_v41 = vld [vmem:[#allocation7 + $0x10] sm:$0xff]  ;;  %v717_v42 = vld [vmem:[#allocation13 + $0xf8] sm:$0xff] }
  0x7b   :  { %460 = vmatpush1.msra.mxu1 %v174_v43  ;;  %1134 = vmatprep.subr.mxu0 %v379_v44  ;;  %v701_v43 = vld [vmem:[#allocation13 + $0x78] sm:$0xff] }
  0x7c   :  { %461 = vmatprep.subr.mxu1 %v172_v45  ;;  %1135 = vmatpush3.msra.mxu0 %v379_v44  ;;  %v716_v44 = vld [vmem:[#allocation13 + $0xf0] sm:$0xff] }
  0x7d   :  { %462 = vmatpush1.msra.mxu1 %v171_v46  ;;  %1136 = vmatprep.subr.mxu0 %v378_v47  ;;  %v700_v45 = vld [vmem:[#allocation13 + $0x70] sm:$0xff]  ;;  %v715_v46 = vld [vmem:[#allocation13 + $0xe8] sm:$0xff] }
  0x7e   :  { %463 = vmatprep.subr.mxu1 %v169_v48  ;;  %1137 = vmatpush3.msra.mxu0 %v378_v47  ;;  %v699_v47 = vld [vmem:[#allocation13 + $0x68] sm:$0xff]  ;;  %v714_v48 = vld [vmem:[#allocation13 + $0xe0] sm:$0xff] }
  0x7f   :  { %464 = vmatpush1.msra.mxu1 %v168_v49  ;;  %1138 = vmatprep.subr.mxu0 %v377_v50  ;;  %v698_v49 = vld [vmem:[#allocation13 + $0x60] sm:$0xff] }
  0x80   :  { %465 = vmatprep.subr.mxu1 %v166_v51  ;;  %1139 = vmatpush3.msra.mxu0 %v377_v50  ;;  %v713_v50 = vld [vmem:[#allocation13 + $0xd8] sm:$0xff] }
  0x81   :  { %466 = vmatpush1.msra.mxu1 %v165_v52  ;;  %1140 = vmatprep.subr.mxu0 %v376_v53  ;;  %v697_v51 = vld [vmem:[#allocation13 + $0x58] sm:$0xff]  ;;  %v696_v52 = vld [vmem:[#allocation13 + $0x50] sm:$0xff] }
  0x82   :  { %467 = vmatprep.subr.mxu1 %v163_v54  ;;  %1141 = vmatpush3.msra.mxu0 %v376_v53  ;;  %v711_v53 = vld [vmem:[#allocation13 + $0xc8] sm:$0xff] }
  0x83   :  { %468 = vmatpush1.msra.mxu1 %v162_v55  ;;  %1142 = vmatprep.subr.mxu0 %v375_v56  ;;  %v695_v54 = vld [vmem:[#allocation13 + $0x48] sm:$0xff]  ;;  %v710_v55 = vld [vmem:[#allocation13 + $0xc0] sm:$0xff] }
  0x84   :  { %469 = vmatprep.subr.mxu1 %v160_v57  ;;  %1143 = vmatpush3.msra.mxu0 %v375_v56  ;;  %v694_v56 = vld [vmem:[#allocation13 + $0x40] sm:$0xff]  ;;  %v709_v57 = vld [vmem:[#allocation13 + $0xb8] sm:$0xff] }
  0x85   :  { %470 = vmatpush1.msra.mxu1 %v159_v58  ;;  %1144 = vmatprep.subr.mxu0 %v374_v59  ;;  %v693_v58 = vld [vmem:[#allocation13 + $0x38] sm:$0xff] }
  0x86   :  { %471 = vmatprep.subr.mxu1 %v157_v60  ;;  %1145 = vmatpush3.msra.mxu0 %v374_v59  ;;  %v708_v59 = vld [vmem:[#allocation13 + $0xb0] sm:$0xff] }
  0x87   :  { %472 = vmatpush1.msra.mxu1 %v156_v61  ;;  %1146 = vmatprep.subr.mxu0 %v373_v62  ;;  %v692_v60 = vld [vmem:[#allocation13 + $0x30] sm:$0xff]  ;;  %v707_v61 = vld [vmem:[#allocation13 + $0xa8] sm:$0xff] }
  0x88   :  { %473 = vmatprep.subr.mxu1 %v154_v63  ;;  %1147 = vmatpush3.msra.mxu0 %v373_v62  ;;  %v691_v62 = vld [vmem:[#allocation13 + $0x28] sm:$0xff]  ;;  %v706_v63 = vld [vmem:[#allocation13 + $0xa0] sm:$0xff] }
  0x89   :  { %474 = vmatpush1.msra.mxu1 %v153_v0  ;;  %1148 = vmatprep.subr.mxu0 %v372_v1  ;;  %v690_v0 = vld [vmem:[#allocation13 + $0x20] sm:$0xff] }
  0x8a   :  { %475 = vmatprep.subr.mxu1 %v151_v2  ;;  %1149 = vmatpush3.msra.mxu0 %v372_v1  ;;  %v705_v1 = vld [vmem:[#allocation13 + $0x98] sm:$0xff] }
  0x8b   :  { %476 = vmatpush1.msra.mxu1 %v150_v3  ;;  %1150 = vmatprep.subr.mxu0 %v371_v4  ;;  %v689_v2 = vld [vmem:[#allocation13 + $0x18] sm:$0xff]  ;;  %v704_v3 = vld [vmem:[#allocation13 + $0x90] sm:$0xff] }
  0x8c   :  { %477 = vmatprep.subr.mxu1 %v148_v5  ;;  %1151 = vmatpush3.msra.mxu0 %v371_v4  ;;  %v688_v4 = vld [vmem:[#allocation13 + $0x10] sm:$0xff]  ;;  %v703_v5 = vld [vmem:[#allocation13 + $0x88] sm:$0xff] }
  0x8d   :  { %478 = vmatpush1.msra.mxu1 %v147_v6  ;;  %1152 = vmatprep.subr.mxu0 %v370_v7  ;;  %v687_v6 = vld [vmem:[#allocation13 + $0x8] sm:$0xff] }
  0x8e   :  { %479 = vmatprep.subr.mxu1 %v145_v8  ;;  %1153 = vmatpush3.msra.mxu0 %v370_v7  ;;  %v702_v7 = vld [vmem:[#allocation13 + $0x80] sm:$0xff] }
  0x8f   :  { %480 = vmatpush1.msra.mxu1 %v144_v9  ;;  %1154 = vmatprep.subr.mxu0 %v369_v10  ;;  %v686_v8 = vld [vmem:[#allocation13] sm:$0xff]  ;;  %v733_v9 = vld [vmem:[#allocation13 + $0x178] sm:$0xff] }
  0x90   :  { %481 = vmatprep.subr.mxu1 %v142_v11  ;;  %1155 = vmatpush3.msra.mxu0 %v369_v10  ;;  %v732_v10 = vld [vmem:[#allocation13 + $0x170] sm:$0xff]  ;;  %v731_v11 = vld [vmem:[#allocation13 + $0x168] sm:$0xff] }
  0x91   :  { %482 = vmatpush1.msra.mxu1 %v141_v12  ;;  %1156 = vmatprep.subr.mxu0 %v368_v13  ;;  %v730_v12 = vld [vmem:[#allocation13 + $0x160] sm:$0xff] }
  0x92   :  { %483 = vmatprep.subr.mxu1 %v139_v14  ;;  %1157 = vmatpush3.msra.mxu0 %v368_v13  ;;  %v729_v13 = vld [vmem:[#allocation13 + $0x158] sm:$0xff]  ;;  %v728_v14 = vld [vmem:[#allocation13 + $0x150] sm:$0xff] }
  0x93   :  { %484 = vmatpush1.msra.mxu1 %v138_v15  ;;  %1158 = vmatprep.subr.mxu0 %v367_v16  ;;  %v727_v15 = vld [vmem:[#allocation13 + $0x148] sm:$0xff] }
  0x94   :  { %485 = vmatprep.subr.mxu1 %v136_v17  ;;  %1159 = vmatpush3.msra.mxu0 %v367_v16  ;;  %v726_v16 = vld [vmem:[#allocation13 + $0x140] sm:$0xff]  ;;  %v725_v17 = vld [vmem:[#allocation13 + $0x138] sm:$0xff] }
  0x95   :  { %486 = vmatpush1.msra.mxu1 %v135_v18  ;;  %1160 = vmatprep.subr.mxu0 %v366_v19  ;;  %v724_v18 = vld [vmem:[#allocation13 + $0x130] sm:$0xff] }
  0x96   :  { %487 = vmatprep.subr.mxu1 %v133_v20  ;;  %1161 = vmatpush3.msra.mxu0 %v366_v19  ;;  %v723_v19 = vld [vmem:[#allocation13 + $0x128] sm:$0xff]  ;;  %v722_v20 = vld [vmem:[#allocation13 + $0x120] sm:$0xff] }
  0x97   :  { %1162 = vmatprep.mubr.f32.mxu0 %v364_v21  ;;  %488 = vmatpush1.msra.mxu1 %v132_v23  ;;  %v721_v21 = vld [vmem:[#allocation13 + $0x118] sm:$0xff]  ;;  %v719_v23 = vld [vmem:[#allocation13 + $0x108] sm:$0xff] }
  0x98   :  { %521 = vmatprep.mubr.f32.mxu1 %v1445_v25  ;;  %1163 = vmatmul.mubr.f32.vlgmr.msra.gmra.mxu0 %v365_v22  ;;  %v720_v22 = vld [vmem:[#allocation13 + $0x110] sm:$0xff] }
  0x99   :  { %522 = vmatmul.mubr.f32.vlgmr.msra.gmra.mxu1 %v1538_v32  ;;  %1165 = vmatprep.subr.mxu0 %v179_v24 }
  0x9a   :  { %527 = vmatprep.mubr.f32.mxu1 %v1445_v25  ;;  %1166 = vmatpush3.msra.mxu0 %v179_v24  ;;  %v718_v24 = vld [vmem:[#allocation13 + $0x100] sm:$0xff]  ;;  %v611_v25 = vlaneseq }
  0x9b   :  { %1197 = vmatprep.mubr.f32.mxu0 %v1538_v32  ;;  %1167 = vmatprep.subr.mxu0 %v176_v26  ;;  %v155_v32 = vld [vmem:[#allocation7 + $0xb8] sm:$0xff] }
  0x9c   :  { %1168 = vmatpush3.msra.mxu0 %v176_v26  ;;  %1004 = vmatprep.subr.mxu1 %v717_v42  ;;  %v612_v26 = vshrl.u32 %v611_v25, 7 }
  0x9d   :  { %528 = vmatmul.mubr.f32.gmra.mxu1 %v1540_v34  ;;  %1169 = vmatprep.subr.mxu0 %v173_v27 }
  0x9e   :  { %1170 = vmatpush3.msra.mxu0 %v173_v27  ;;  %1005 = vmatpush3.msra.mxu1 %v701_v43 }
  0x9f   :  { %1171 = vmatprep.subr.mxu0 %v170_v28  ;;  %1006 = vmatprep.subr.mxu1 %v716_v44 }
  0xa0   :  { %1172 = vmatpush3.msra.mxu0 %v170_v28  ;;  %1007 = vmatpush3.msra.mxu1 %v700_v45  ;;  %v613_v28 = vsub.s32 0, %v612_v26 }
  0xa1   :  { %1173 = vmatprep.subr.mxu0 %v167_v29  ;;  %1008 = vmatprep.subr.mxu1 %v715_v46 }
  0xa2   :  { %1174 = vmatpush3.msra.mxu0 %v167_v29  ;;  %1009 = vmatpush3.msra.mxu1 %v699_v47 }
  0xa3   :  { %1175 = vmatprep.subr.mxu0 %v164_v30  ;;  %1010 = vmatprep.subr.mxu1 %v714_v48 }
  0xa4   :  { %1176 = vmatpush3.msra.mxu0 %v164_v30  ;;  %1011 = vmatpush3.msra.mxu1 %v698_v49  ;;  %v609_v30 = vld [vmem:[%s1576_s6] sm:$0x7] }
  0xa5   :  { %1177 = vmatprep.subr.mxu0 %v161_v31  ;;  %1012 = vmatprep.subr.mxu1 %v713_v50 }
  0xa6   :  { %1178 = vmatpush3.msra.mxu0 %v161_v31  ;;  %1013 = vmatpush3.msra.mxu1 %v697_v51  ;;  %v617_v31 = vsub.s32 1, %v612_v26 }
  0xa7   :  { %1179 = vmatprep.subr.mxu0 %v158_v33 }
  0xa8   :  { %1180 = vmatpush3.msra.mxu0 %v158_v33 }
  0xa9   :  { %1181 = vmatprep.subr.mxu0 %v155_v32 }
  0xaa   :  { %1182 = vmatpush3.msra.mxu0 %v155_v32  ;;  %v614_v32 = vrot.slane %v609_v30, %v613_v28 }
  0xab   :  { %1183 = vmatprep.subr.mxu0 %v152_v35 }
  0xac   :  { %1184 = vmatpush3.msra.mxu0 %v152_v35 }
  0xad   :  { %1185 = vmatprep.subr.mxu0 %v149_v36 }
  0xae   :  { %1186 = vmatpush3.msra.mxu0 %v149_v36 }
  0xaf   :  { %1187 = vmatprep.subr.mxu0 %v146_v37 }
  0xb0   :  { %1188 = vmatpush3.msra.mxu0 %v146_v37 }
  0xb1   :  { %1189 = vmatprep.subr.mxu0 %v143_v38 }
  0xb2   :  { %1190 = vmatpush3.msra.mxu0 %v143_v38  ;;  %v618_v38 = vrot.slane %v609_v30, %v617_v31 }
  0xb3   :  { %1191 = vmatprep.subr.mxu0 %v140_v39 }
  0xb4   :  { %1192 = vmatpush3.msra.mxu0 %v140_v39 }
  0xb5   :  { %1193 = vmatprep.subr.mxu0 %v137_v40 }
  0xb6   :  { %1194 = vmatpush3.msra.mxu0 %v137_v40 }
  0xb7   :  { %1195 = vmatprep.subr.mxu0 %v134_v41 }
  0xb8   :  { %1196 = vmatpush3.msra.mxu0 %v134_v41 }
  0xb9   :  { %1198 = vmatmul.mubr.f32.vlgmr.msra.gmra.mxu0 %v1540_v34  ;;  %v712_v34 = vld [vmem:[#allocation13 + $0xd0] sm:$0xff]  ;;  %1200 = vmatprep.subr.mxu0 %v733_v9 }
  0xba   :  { %1014 = vmatprep.subr.mxu1 %v712_v34  ;;  %1201 = vmatpush3.msra.mxu0 %v733_v9 }
  0xbb   :  { %1015 = vmatpush3.msra.mxu1 %v696_v52  ;;  %1202 = vmatprep.subr.mxu0 %v732_v10 }
  0xbc   :  { %1016 = vmatprep.subr.mxu1 %v711_v53  ;;  %1203 = vmatpush3.msra.mxu0 %v732_v10 }
  0xbd   :  { %1017 = vmatpush3.msra.mxu1 %v695_v54  ;;  %1204 = vmatprep.subr.mxu0 %v731_v11 }
  0xbe   :  { %1018 = vmatprep.subr.mxu1 %v710_v55  ;;  %1205 = vmatpush3.msra.mxu0 %v731_v11 }
  0xbf   :  { %1019 = vmatpush3.msra.mxu1 %v694_v56  ;;  %1206 = vmatprep.subr.mxu0 %v730_v12 }
  0xc0   :  { %1020 = vmatprep.subr.mxu1 %v709_v57  ;;  %1207 = vmatpush3.msra.mxu0 %v730_v12 }
  0xc1   :  { %1021 = vmatpush3.msra.mxu1 %v693_v58  ;;  %1208 = vmatprep.subr.mxu0 %v729_v13 }
  0xc2   :  { %1022 = vmatprep.subr.mxu1 %v708_v59  ;;  %1209 = vmatpush3.msra.mxu0 %v729_v13 }
  0xc3   :  { %1023 = vmatpush3.msra.mxu1 %v692_v60  ;;  %1210 = vmatprep.subr.mxu0 %v728_v14 }
  0xc4   :  { %1024 = vmatprep.subr.mxu1 %v707_v61  ;;  %1211 = vmatpush3.msra.mxu0 %v728_v14 }
  0xc5   :  { %1025 = vmatpush3.msra.mxu1 %v691_v62  ;;  %1212 = vmatprep.subr.mxu0 %v727_v15 }
  0xc6   :  { %1026 = vmatprep.subr.mxu1 %v706_v63  ;;  %1213 = vmatpush3.msra.mxu0 %v727_v15 }
  0xc7   :  { %1027 = vmatpush3.msra.mxu1 %v690_v0  ;;  %1214 = vmatprep.subr.mxu0 %v726_v16 }
  0xc8   :  { %1028 = vmatprep.subr.mxu1 %v705_v1  ;;  %1215 = vmatpush3.msra.mxu0 %v726_v16 }
  0xc9   :  { %1029 = vmatpush3.msra.mxu1 %v689_v2  ;;  %1216 = vmatprep.subr.mxu0 %v725_v17 }
  0xca   :  { %1030 = vmatprep.subr.mxu1 %v704_v3  ;;  %1217 = vmatpush3.msra.mxu0 %v725_v17 }
  0xcb   :  { %1031 = vmatpush3.msra.mxu1 %v688_v4  ;;  %1218 = vmatprep.subr.mxu0 %v724_v18 }
  0xcc   :  { %1032 = vmatprep.subr.mxu1 %v703_v5  ;;  %1219 = vmatpush3.msra.mxu0 %v724_v18 }
  0xcd   :  { %1033 = vmatpush3.msra.mxu1 %v687_v6  ;;  %1220 = vmatprep.subr.mxu0 %v723_v19 }
  0xce   :  { %1034 = vmatprep.subr.mxu1 %v702_v7  ;;  %1221 = vmatpush3.msra.mxu0 %v723_v19  ;;  %v621_v7 = vsub.s32 2, %v612_v26 }
  0xcf   :  { %1035 = vmatpush3.msra.mxu1 %v686_v8  ;;  %1222 = vmatprep.subr.mxu0 %v722_v20 }
  0xd0   :  { %1223 = vmatpush3.msra.mxu0 %v722_v20  ;;  %v622_v16 = vrot.slane %v609_v30, %v621_v7 }
  0xd1   :  { %1224 = vmatprep.subr.mxu0 %v721_v21 }
  0xd2   :  { %1225 = vmatpush3.msra.mxu0 %v721_v21 }
  0xd3   :  { %1226 = vmatprep.subr.mxu0 %v720_v22 }
  0xd4   :  { %1227 = vmatpush3.msra.mxu0 %v720_v22 }
  0xd5   :  { %1228 = vmatprep.subr.mxu0 %v719_v23 }
  0xd6   :  { %1229 = vmatpush3.msra.mxu0 %v719_v23 }
  0xd7   :  { %1230 = vmatprep.subr.mxu0 %v718_v24 }
  0xd8   :  { %1231 = vmatpush3.msra.mxu0 %v718_v24 }
 0x136   :  { %v1094_v29 = vpop.f32.mrf.mxu0 }
 0x138   :  { %v1129_v27 = vpop.f32.mrf.mxu1  ;;  %v262_v35 = vpop.f32.mrf.mxu0 }
 0x13a   :  { %v355_v33 = vpop.f32.mrf.mxu1 }
 0x158   :  { %v1164_v5 = vpop.f32.mrf.mxu0 }
 0x159   :  { %v523_v36 = vpop.f32.mrf.mxu1 }
 0x15a   :  { %v524_v37 = vadd.f32 %v523_v36, %v262_v35  ;;  %v448_v13 = vpop.f32.mrf.mxu0 }
 0x15b   :  { %v525_v39 = vpop.f32.mrf.mxu1 }
 0x15c   :  { %v626_v40 = vadd.f32 %v614_v32, %v524_v37  ;;  %v526_v41 = vadd.f32 %v525_v39, %v355_v33 }
 0x15d   :  { %v529_v42 = vpop.f32.mrf.mxu1 }
 0x15e   :  { %v644_v43 = vmul.f32 0.044715, %v626_v40  ;;  %v627_v44 = vadd.f32 %v618_v38, %v526_v41  ;;  %v530_v45 = vadd.f32 %v1094_v29, %v529_v42  ;;  %v638_v51 = vmul.f32 0.7978846, %v626_v40 }
 0x15f   :  { %v531_v46 = vpop.f32.mrf.mxu1  ;;  %v632_v11 = vmul.f32 0.5, %v626_v40 }
 0x160   :  { %v650_v47 = vmul.f32 %v644_v43, %v626_v40  ;;  %v645_v48 = vmul.f32 0.044715, %v627_v44  ;;  %v532_v49 = vadd.f32 %v1129_v27, %v531_v46  ;;  %v629_v50 = vadd.f32 %v614_v32, %v530_v45 }
 0x161   :  { %v639_v56 = vmul.f32 0.7978846, %v627_v44  ;;  %v633_v9 = vmul.f32 0.5, %v627_v44 }
 0x162   :  { %v656_v34 = vadd.f32 1.0, %v650_v47  ;;  %v651_v52 = vmul.f32 %v645_v48, %v627_v44  ;;  %v630_v53 = vadd.f32 %v618_v38, %v532_v49  ;;  %v647_v54 = vmul.f32 0.044715, %v629_v50 }
 0x163   :  { %v641_v62 = vmul.f32 0.7978846, %v629_v50  ;;  %v635_v23 = vmul.f32 0.5, %v629_v50 }
 0x164   :  { %v662_v55 = vmul.f32 %v656_v34, %v638_v51  ;;  %v657_v57 = vadd.f32 1.0, %v651_v52  ;;  %v648_v58 = vmul.f32 0.044715, %v630_v53  ;;  %v653_v59 = vmul.f32 %v647_v54, %v629_v50  ;;  %v931_v54 = vld [vmem:[%s1578_s8] ss:$0 sm:$0xff]  ;;  %s1446_s8 = smov [#allocation14]  }
 0x165   :  { %v642_v0 = vmul.f32 0.7978846, %v630_v53  ;;  %v636_v20 = vmul.f32 0.5, %v630_v53  ;;  %s916_s1 = sshll.u32 %s1446_s8, 4  ;;  %s917_s1 = int_to_ptr.vmem [resolvable:$true] %s916_s1 }
 0x166   :  { %1248 = vtanh.f32 %v662_v55  ;;  %v654_v60 = vmul.f32 %v648_v58, %v630_v53  ;;  %v663_v61 = vmul.f32 %v657_v57, %v639_v56  ;;  %v659_v63 = vadd.f32 1.0, %v653_v59  ;;  %s1404_s25 = scalar_lea.vmem %s917_s1, 256  ;;  %p1409_p8 = scmp.lt.s32.totalorder %s917_s1, %s917_s1 }
 0x167   :  { %p1405_p7 = scmp.ne.s32.totalorder %s917_s1, %s1404_s25  ;;  %p1410_p9 = scmp.lt.s32.totalorder %s1404_s25, %s1404_s25 }
 0x168   :  { %v660_v1 = vadd.f32 1.0, %v654_v60  ;;  %1250 = vtanh.f32 %v663_v61  ;;  %v665_v2 = vmul.f32 %v659_v63, %v641_v62 }
 0x169   :  { %p1411_p10 = por %p1410_p9, %p1409_p8 }
 0x16a   :  { %v666_v3 = vmul.f32 %v660_v1, %v642_v0  ;;  %1252 = vtanh.f32 %v665_v2 }
 0x16b   :  { %p1412_p11 = pnand %p1411_p10, %p1405_p7 }
 0x16c   :  { %1254 = vtanh.f32 %v666_v3 }
 0x173   :  { %v1249_v4 = vpop.eup %1248 }
 0x174   :  { %v674_v8 = vadd.f32 1.0, %v1249_v4 }
 0x175   :  { %v1251_v6 = vpop.eup %1250 }
 0x176   :  { %v675_v10 = vadd.f32 1.0, %v1251_v6  ;;  %v680_v17 = vmul.f32 %v674_v8, %v632_v11 }
 0x177   :  { %v1253_v12 = vpop.eup %1252 }
 0x178   :  { %v681_v14 = vmul.f32 %v675_v10, %v633_v9  ;;  %v677_v18 = vadd.f32 1.0, %v1253_v12 }
 0x179   :  { %v1255_v15 = vpop.eup %1254  ;;  %v1199_v19 = vpop.f32.mrf.mxu0 }
 0x17a   :  { %805 = vmatprep.mubr.f32.mxu1 %v681_v14  ;;  %v678_v21 = vadd.f32 1.0, %v1255_v15  ;;  %v606_v22 = vadd.f32 %v1199_v19, %v1164_v5  ;;  %v683_v28 = vmul.f32 %v677_v18, %v635_v23 }
 0x17b   :  { %806 = vmatmul.mubr.f32.vlgmr.msra.gmra.mxu1 %v680_v17  ;;  %v600_v24 = vpop.f32.mrf.mxu0 }
 0x17c   :  { %v684_v25 = vmul.f32 %v678_v21, %v636_v20  ;;  %v631_v26 = vadd.f32 %v622_v16, %v606_v22  ;;  %v601_v27 = vadd.f32 %v600_v24, %v448_v13 }
 0x17e   :  { %810 = vmatprep.mubr.f32.mxu1 %v684_v25  ;;  %v649_v29 = vmul.f32 0.044715, %v631_v26  ;;  %v628_v31 = vadd.f32 %v622_v16, %v601_v27  ;;  %v643_v32 = vmul.f32 0.7978846, %v631_v26  ;;  %v637_v46 = vmul.f32 0.5, %v631_v26 }
 0x17f   :  { %811 = vmatmul.mubr.f32.gmra.mxu1 %v683_v28 }
 0x180   :  { %v655_v33 = vmul.f32 %v649_v29, %v631_v26  ;;  %v646_v30 = vmul.f32 0.044715, %v628_v31  ;;  %v640_v38 = vmul.f32 0.7978846, %v628_v31  ;;  %v634_v44 = vmul.f32 0.5, %v628_v31 }
 0x182   :  { %v661_v35 = vadd.f32 1.0, %v655_v33  ;;  %v652_v36 = vmul.f32 %v646_v30, %v628_v31 }
 0x184   :  { %v667_v37 = vmul.f32 %v661_v35, %v643_v32  ;;  %v658_v39 = vadd.f32 1.0, %v652_v36 }
 0x186   :  { %v664_v40 = vmul.f32 %v658_v39, %v640_v38  ;;  %1256 = vtanh.f32 %v667_v37 }
 0x188   :  { %1258 = vtanh.f32 %v664_v40 }
 0x193   :  { %v1257_v41 = vpop.eup %1256 }
 0x194   :  { %v679_v43 = vadd.f32 1.0, %v1257_v41 }
 0x195   :  { %v1259_v42 = vpop.eup %1258 }
 0x196   :  { %v676_v45 = vadd.f32 1.0, %v1259_v42  ;;  %v685_v48 = vmul.f32 %v679_v43, %v637_v46 }
 0x198   :  { %v682_v47 = vmul.f32 %v676_v45, %v634_v44 }
 0x19a   :  { %1232 = vmatprep.mubr.f32.mxu0 %v682_v47 }
 0x19b   :  { %1233 = vmatmul.mubr.f32.vlgmr.msra.gmra.mxu0 %v685_v48 }
 0x23b   :  { %v1036_v49 = vpop.f32.mrf.mxu1 }
 0x23d   :  { %v1037_v50 = vpop.f32.mrf.mxu1 }
 0x23e   :  { %v1038_v53 = vadd.f32 %v1037_v50, %v1036_v49 }
 0x23f   :  { %v1039_v51 = vpop.f32.mrf.mxu1 }
 0x240   :  { %v808_v58 = vadd.f32 %v1038_v53, %v931_v54 }
 0x241   :  { %v1040_v34 = vpop.f32.mrf.mxu1 }
 0x242   :  { %v1041_v52 = vadd.f32 %v1040_v34, %v1039_v51 }
 0x244   :  { %v813_v55 = vadd.f32 %v1041_v52, %v931_v54 }
 0x25b   :  { %v1234_v56 = vpop.f32.mrf.mxu0 }
 0x25c   :  { %v888_v57 = vadd.f32 %v1234_v56, %v813_v55 }
 0x25d   :  { %v882_v59 = vpop.f32.mrf.mxu0 }
 0x25e   :  { %v896_v60 = vmul.f32 0.044715, %v888_v57  ;;  %v883_v61 = vadd.f32 %v882_v59, %v808_v58  ;;  %v894_v0 = vmul.f32 0.7978846, %v888_v57  ;;  %v892_v8 = vmul.f32 0.5, %v888_v57 }
 0x260   :  { %v898_v62 = vmul.f32 %v896_v60, %v888_v57  ;;  %v895_v63 = vmul.f32 0.044715, %v883_v61  ;;  %v893_v4 = vmul.f32 0.7978846, %v883_v61  ;;  %v891_v11 = vmul.f32 0.5, %v883_v61 }
 0x262   :  { %v900_v1 = vadd.f32 1.0, %v898_v62  ;;  %v897_v2 = vmul.f32 %v895_v63, %v883_v61 }
 0x264   :  { %v902_v3 = vmul.f32 %v900_v1, %v894_v0  ;;  %v899_v5 = vadd.f32 1.0, %v897_v2 }
 0x266   :  { %v901_v6 = vmul.f32 %v899_v5, %v893_v4  ;;  %1260 = vtanh.f32 %v902_v3 }
 0x268   :  { %1262 = vtanh.f32 %v901_v6 }
 0x273   :  { %v1261_v7 = vpop.eup %1260 }
 0x274   :  { %v906_v9 = vadd.f32 1.0, %v1261_v7 }
 0x275   :  { %v1263_v10 = vpop.eup %1262 }
 0x276   :  { %v905_v12 = vadd.f32 1.0, %v1263_v10  ;;  %v908_v13 = vmul.f32 %v906_v9, %v892_v8 }
 0x278   :  { %v907_v14 = vmul.f32 %v905_v12, %v891_v11  ;;  %910 = vst [vmem:[#allocation14 + $0x8] sm:$0xff] %v908_v13 }
 0x27a   :  { %909 = vst [vmem:[#allocation14] sm:$0xff] %v907_v14 }
 0x27b   :  { %1415 = shalt.err (!%p1412_p11)
}
 0x27c   :  { %922 = dma.vmem_to_hbm [thread:$0]  %s917_s1, 256, %s1579_s9, [#allocation4], %s1436_s14, %s1436_s14, %s1437_s15  }
 0x27d   :  { %1432 = dma.done.wait [#allocation4], 256  }
 0x27e   :  { %1433 = vsyncadd [#allocation4], 4294967040 }
 0x27f   :  { %926 = vsyncpa [#allocation3], 1 }
 0x280   :  { %927 = vsyncpa [#allocation6], 1 }
 0x281   :  { %928 = vsyncpa [#allocation9], 1 }
 0x282   :  { %929 = vsyncpa [#allocation12], 1 }
 0x283   :  { %930 = vsyncpa [#allocation4], 1 }

</bundles_post_ra>
